<compile_context>
chip_gen: v6e
topology: v6e:2x2x1
jax: 0.10.0
libtpu: 0.0.40
codegen_flags: <defaults>
</compile_context>

<pallas_src>
import jax
import jax.numpy as jnp
from jax import lax
from jax.experimental import pallas as pl
from jax.experimental.pallas import tpu as pltpu


HEAD_OUT = 7    # 1 (age) + 2 (gender) + 2 (handedness) + 2 (class)
HEAD_PAD = 128  # lane-dense padded width of fused head output


def _model3_kernel(
    x_ref,
    w1_ref, b1_ref,
    w2_ref, b2_ref,
    w3_ref, b3_ref,
    wh_ref, bh_ref,
    out_ref,
):
    x = x_ref[...]

    # shared trunk: Linear(20,128) -> ReLU -> [Dropout id] -> Linear(128,64) -> ReLU
    #               -> [Dropout id] -> Linear(64,32) -> ReLU
    h = jnp.maximum(
        jnp.dot(x, w1_ref[...], preferred_element_type=jnp.float32) + b1_ref[...], 0.0)
    h = jnp.maximum(
        jnp.dot(h, w2_ref[...], preferred_element_type=jnp.float32) + b2_ref[...], 0.0)
    h = jnp.maximum(
        jnp.dot(h, w3_ref[...], preferred_element_type=jnp.float32) + b3_ref[...], 0.0)

    # fused heads: single (32, 128) weight, columns = [age | gender | hand | class | 0-pad]
    heads = jnp.dot(h, wh_ref[...], preferred_element_type=jnp.float32) + bh_ref[...]

    # only the age head (column 0) has a ReLU; other heads are plain linear.
    col = lax.broadcasted_iota(jnp.int32, heads.shape, dimension=1)
    out_ref[...] = jnp.where(col == 0, jnp.maximum(heads, 0.0), heads)


def model3_forward(x, params, *, block_b=1024):
    """Run Model3Net forward. params = 14 arrays (W/b per Linear, W is (in,out))."""
    (w1, b1, w2, b2, w3, b3, wa, ba, wg, bg, wh, bh, wc, bc) = params
    B = x.shape[0]

    # Fuse the four head weights/biases along the output dim, pad lane axis to 128.
    w_heads = jnp.concatenate([wa, wg, wh, wc], axis=1)          # (32, 7)
    b_heads = jnp.concatenate([ba, bg, bh, bc], axis=1)          # (1, 7)
    w_heads = jnp.pad(w_heads, ((0, 0), (0, HEAD_PAD - HEAD_OUT)))
    b_heads = jnp.pad(b_heads, ((0, 0), (0, HEAD_PAD - HEAD_OUT)))

    # Batch tile: multiple of 8 sublanes, capped at block_b (sized for v7x 64 MiB VMEM).
    tb = min(block_b, max(8, ((B + 7) // 8) * 8))
    b_pad = pl.cdiv(B, tb) * tb
    if b_pad != B:
        x = jnp.pad(x, ((0, b_pad - B), (0, 0)))

    grid = (b_pad // tb,)
    const = lambda i: (0, 0)   # weights/biases stay resident across the batch grid

    flops = 2 * b_pad * (20 * 128 + 128 * 64 + 64 * 32 + 32 * HEAD_PAD)
    bytes_accessed = 4 * (
        b_pad * (20 + HEAD_PAD)
        + 20 * 128 + 128 + 128 * 64 + 64 + 64 * 32 + 32 + 32 * HEAD_PAD + HEAD_PAD
    )

    out = pl.pallas_call(
        _model3_kernel,
        out_shape=jax.ShapeDtypeStruct((b_pad, HEAD_PAD), jnp.float32),
        grid_spec=pltpu.PrefetchScalarGridSpec(
            num_scalar_prefetch=0,
            grid=grid,
            in_specs=[
                pl.BlockSpec((tb, 20), lambda i: (i, 0)),        # x: batch-tiled
                pl.BlockSpec((20, 128), const), pl.BlockSpec((1, 128), const),
                pl.BlockSpec((128, 64), const), pl.BlockSpec((1, 64), const),
                pl.BlockSpec((64, 32), const), pl.BlockSpec((1, 32), const),
                pl.BlockSpec((32, HEAD_PAD), const), pl.BlockSpec((1, HEAD_PAD), const),
            ],
            out_specs=pl.BlockSpec((tb, HEAD_PAD), lambda i: (i, 0)),
        ),
        compiler_params=pltpu.CompilerParams(
            dimension_semantics=("parallel",),
            vmem_limit_bytes=64 << 20,
        ),
        cost_estimate=pl.CostEstimate(
            flops=flops, transcendentals=0, bytes_accessed=bytes_accessed),
    )(x, w1, b1, w2, b2, w3, b3, w_heads, b_heads)

    out = out[:B]
    age = out[:, 0:1]
    gender = out[:, 1:3]
    handedness = out[:, 3:5]
    class_out = out[:, 5:7]
    return age, gender, handedness, class_out


def init_params(key):
    """Deterministic parameter init matching Model3Net shapes.

    Weights are (in, out); biases are (1, out) for 2-D TPU-friendly broadcasting.
    """
    dims = [
        (20, 128),  # shared.0
        (128, 64),  # shared.3
        (64, 32),   # shared.6
        (32, 1),    # age_head.0
        (32, 2),    # gender_head
        (32, 2),    # handedness_head
        (32, 2),    # class_head
    ]
    params = []
    for din, dout in dims:
        kw, kb, key = jax.random.split(key, 3)
        bound = 1.0 / jnp.sqrt(din)  # PyTorch default Linear init range
        w = jax.random.uniform(kw, (din, dout), jnp.float32, -bound, bound)
        b = jax.random.uniform(kb, (1, dout), jnp.float32, -bound, bound)
        params.append(w)
        params.append(b)
    return params


if __name__ == "__main__":
    key = jax.random.PRNGKey(0)
    kx, kp = jax.random.split(key)

    B = 8
    x = jax.random.normal(kx, (B, 20), dtype=jnp.float32)
    params = init_params(kp)

    age, gender, handedness, class_out = model3_forward(x, params)
    jax.block_until_ready((age, gender, handedness, class_out))

    # reference check in plain JAX (dropout = identity in eval)
    def ref(x, p):
        (w1, b1, w2, b2, w3, b3, wa, ba, wg, bg, wh, bh, wc, bc) = p
        h = jnp.maximum(x @ w1 + b1, 0.0)
        h = jnp.maximum(h @ w2 + b2, 0.0)
        h = jnp.maximum(h @ w3 + b3, 0.0)
        return (
            jnp.maximum(h @ wa + ba, 0.0),
            h @ wg + bg,
            h @ wh + bh,
            h @ wc + bc,
        )

    r_age, r_g, r_h, r_c = ref(x, params)
    assert jnp.allclose(age, r_age, atol=1e-5)
    assert jnp.allclose(gender, r_g, atol=1e-5)
    assert jnp.allclose(handedness, r_h, atol=1e-5)
    assert jnp.allclose(class_out, r_c, atol=1e-5)
    assert age.shape == (B, 1) and gender.shape == (B, 2)
    assert handedness.shape == (B, 2) and class_out.shape == (B, 2)

    print("KERNEL_OK")
</pallas_src>

<mosaic_0001>
module attributes {stable_mosaic.version = 11 : i64} {
  func.func @_model3_kernel(%arg0: i32, %arg1: memref<8x20xf32, #tpu.memory_space<vmem>>, %arg2: memref<20x128xf32, #tpu.memory_space<vmem>>, %arg3: memref<1x128xf32, #tpu.memory_space<vmem>>, %arg4: memref<128x64xf32, #tpu.memory_space<vmem>>, %arg5: memref<1x64xf32, #tpu.memory_space<vmem>>, %arg6: memref<64x32xf32, #tpu.memory_space<vmem>>, %arg7: memref<1x32xf32, #tpu.memory_space<vmem>>, %arg8: memref<32x128xf32, #tpu.memory_space<vmem>>, %arg9: memref<1x128xf32, #tpu.memory_space<vmem>>, %arg10: memref<8x128xf32, #tpu.memory_space<vmem>>) attributes {dimension_semantics = [#tpu.dimension_semantics<parallel>], iteration_bounds = array<i64: 1>, scalar_prefetch = 0 : i64, scratch_operands = 0 : i64, tpu.core_type = #tpu.core_type<tc>, window_params = [{transform_indices = @transform_0, window_bounds = array<i64: 8, 20>}, {pipeline_mode = #tpu.pipeline_mode<synchronous>, transform_indices = @transform_1, window_bounds = array<i64: 20, 128>}, {pipeline_mode = #tpu.pipeline_mode<synchronous>, transform_indices = @transform_2, window_bounds = array<i64: 1, 128>}, {pipeline_mode = #tpu.pipeline_mode<synchronous>, transform_indices = @transform_3, window_bounds = array<i64: 128, 64>}, {pipeline_mode = #tpu.pipeline_mode<synchronous>, transform_indices = @transform_4, window_bounds = array<i64: 1, 64>}, {pipeline_mode = #tpu.pipeline_mode<synchronous>, transform_indices = @transform_5, window_bounds = array<i64: 64, 32>}, {pipeline_mode = #tpu.pipeline_mode<synchronous>, transform_indices = @transform_6, window_bounds = array<i64: 1, 32>}, {pipeline_mode = #tpu.pipeline_mode<synchronous>, transform_indices = @transform_7, window_bounds = array<i64: 32, 128>}, {pipeline_mode = #tpu.pipeline_mode<synchronous>, transform_indices = @transform_8, window_bounds = array<i64: 1, 128>}, {transform_indices = @transform_9, window_bounds = array<i64: 8, 128>}]} {
    %c0 = arith.constant 0 : index
    %c0_0 = arith.constant 0 : index
    %0 = vector.load %arg1[%c0, %c0_0] : memref<8x20xf32, #tpu.memory_space<vmem>>, vector<8x20xf32>
    %c0_1 = arith.constant 0 : index
    %c0_2 = arith.constant 0 : index
    %1 = vector.load %arg2[%c0_1, %c0_2] : memref<20x128xf32, #tpu.memory_space<vmem>>, vector<20x128xf32>
    %cst = arith.constant dense<0.000000e+00> : vector<8x128xf32>
    %2 = tpu.matmul %0, %1, %cst {dimension_numbers = #tpu.dot_dimension_numbers<[1], [0], [0], [1], [0, 0, 1, 1], [], []>} : vector<8x20xf32>, vector<20x128xf32>, vector<8x128xf32> -> vector<8x128xf32>
    %c0_3 = arith.constant 0 : index
    %c0_4 = arith.constant 0 : index
    %3 = vector.load %arg3[%c0_3, %c0_4] : memref<1x128xf32, #tpu.memory_space<vmem>>, vector<1x128xf32>
    %4 = vector.broadcast %3 : vector<1x128xf32> to vector<8x128xf32>
    %5 = arith.addf %2, %4 : vector<8x128xf32>
    %cst_5 = arith.constant 0.000000e+00 : f32
    %6 = vector.broadcast %cst_5 : f32 to vector<8x128xf32>
    %7 = arith.maximumf %5, %6 : vector<8x128xf32>
    %c0_6 = arith.constant 0 : index
    %c0_7 = arith.constant 0 : index
    %8 = vector.load %arg4[%c0_6, %c0_7] : memref<128x64xf32, #tpu.memory_space<vmem>>, vector<128x64xf32>
    %cst_8 = arith.constant dense<0.000000e+00> : vector<8x64xf32>
    %9 = tpu.matmul %7, %8, %cst_8 {dimension_numbers = #tpu.dot_dimension_numbers<[1], [0], [0], [1], [0, 0, 1, 1], [], []>} : vector<8x128xf32>, vector<128x64xf32>, vector<8x64xf32> -> vector<8x64xf32>
    %c0_9 = arith.constant 0 : index
    %c0_10 = arith.constant 0 : index
    %10 = vector.load %arg5[%c0_9, %c0_10] : memref<1x64xf32, #tpu.memory_space<vmem>>, vector<1x64xf32>
    %11 = vector.broadcast %10 : vector<1x64xf32> to vector<8x64xf32>
    %12 = arith.addf %9, %11 : vector<8x64xf32>
    %cst_11 = arith.constant 0.000000e+00 : f32
    %13 = vector.broadcast %cst_11 : f32 to vector<8x64xf32>
    %14 = arith.maximumf %12, %13 : vector<8x64xf32>
    %c0_12 = arith.constant 0 : index
    %c0_13 = arith.constant 0 : index
    %15 = vector.load %arg6[%c0_12, %c0_13] : memref<64x32xf32, #tpu.memory_space<vmem>>, vector<64x32xf32>
    %cst_14 = arith.constant dense<0.000000e+00> : vector<8x32xf32>
    %16 = tpu.matmul %14, %15, %cst_14 {dimension_numbers = #tpu.dot_dimension_numbers<[1], [0], [0], [1], [0, 0, 1, 1], [], []>} : vector<8x64xf32>, vector<64x32xf32>, vector<8x32xf32> -> vector<8x32xf32>
    %c0_15 = arith.constant 0 : index
    %c0_16 = arith.constant 0 : index
    %17 = vector.load %arg7[%c0_15, %c0_16] : memref<1x32xf32, #tpu.memory_space<vmem>>, vector<1x32xf32>
    %18 = vector.broadcast %17 : vector<1x32xf32> to vector<8x32xf32>
    %19 = arith.addf %16, %18 : vector<8x32xf32>
    %cst_17 = arith.constant 0.000000e+00 : f32
    %20 = vector.broadcast %cst_17 : f32 to vector<8x32xf32>
    %21 = arith.maximumf %19, %20 : vector<8x32xf32>
    %c0_18 = arith.constant 0 : index
    %c0_19 = arith.constant 0 : index
    %22 = vector.load %arg8[%c0_18, %c0_19] : memref<32x128xf32, #tpu.memory_space<vmem>>, vector<32x128xf32>
    %cst_20 = arith.constant dense<0.000000e+00> : vector<8x128xf32>
    %23 = tpu.matmul %21, %22, %cst_20 {dimension_numbers = #tpu.dot_dimension_numbers<[1], [0], [0], [1], [0, 0, 1, 1], [], []>} : vector<8x32xf32>, vector<32x128xf32>, vector<8x128xf32> -> vector<8x128xf32>
    %c0_21 = arith.constant 0 : index
    %c0_22 = arith.constant 0 : index
    %24 = vector.load %arg9[%c0_21, %c0_22] : memref<1x128xf32, #tpu.memory_space<vmem>>, vector<1x128xf32>
    %25 = vector.broadcast %24 : vector<1x128xf32> to vector<8x128xf32>
    %26 = arith.addf %23, %25 : vector<8x128xf32>
    %27 = tpu.iota {dimensions = array<i32: 1>} : vector<8x128xi32>
    %c0_i32 = arith.constant 0 : i32
    %28 = vector.broadcast %c0_i32 : i32 to vector<8x128xi32>
    %29 = arith.cmpi eq, %27, %28 : vector<8x128xi32>
    %cst_23 = arith.constant 0.000000e+00 : f32
    %30 = vector.broadcast %cst_23 : f32 to vector<8x128xf32>
    %31 = arith.maximumf %26, %30 : vector<8x128xf32>
    %32 = arith.select %29, %31, %26 : vector<8x128xi1>, vector<8x128xf32>
    %c0_24 = arith.constant 0 : index
    %c0_25 = arith.constant 0 : index
    %33 = vector.load %arg10[%c0_24, %c0_25] : memref<8x128xf32, #tpu.memory_space<vmem>>, vector<8x128xf32>
    tpu.vector_store %arg10[%c0_24, %c0_25], %32 {strides = array<i32>} : memref<8x128xf32, #tpu.memory_space<vmem>>, vector<8x128xf32>,
    return
  }
  func.func @transform_0(%arg0: i32) -> (i32, i32) {
    %c0_i32 = arith.constant 0 : i32
    %c0_i32_0 = arith.constant 0 : i32
    return %arg0, %c0_i32 : i32, i32
  }
  func.func @transform_1(%arg0: i32) -> (i32, i32) {
    %c0_i32 = arith.constant 0 : i32
    %c0_i32_0 = arith.constant 0 : i32
    %c0_i32_1 = arith.constant 0 : i32
    return %c0_i32, %c0_i32_0 : i32, i32
  }
  func.func @transform_2(%arg0: i32) -> (i32, i32) {
    %c0_i32 = arith.constant 0 : i32
    %c0_i32_0 = arith.constant 0 : i32
    %c0_i32_1 = arith.constant 0 : i32
    return %c0_i32, %c0_i32_0 : i32, i32
  }
  func.func @transform_3(%arg0: i32) -> (i32, i32) {
    %c0_i32 = arith.constant 0 : i32
    %c0_i32_0 = arith.constant 0 : i32
    %c0_i32_1 = arith.constant 0 : i32
    return %c0_i32, %c0_i32_0 : i32, i32
  }
  func.func @transform_4(%arg0: i32) -> (i32, i32) {
    %c0_i32 = arith.constant 0 : i32
    %c0_i32_0 = arith.constant 0 : i32
    %c0_i32_1 = arith.constant 0 : i32
    return %c0_i32, %c0_i32_0 : i32, i32
  }
  func.func @transform_5(%arg0: i32) -> (i32, i32) {
    %c0_i32 = arith.constant 0 : i32
    %c0_i32_0 = arith.constant 0 : i32
    %c0_i32_1 = arith.constant 0 : i32
    return %c0_i32, %c0_i32_0 : i32, i32
  }
  func.func @transform_6(%arg0: i32) -> (i32, i32) {
    %c0_i32 = arith.constant 0 : i32
    %c0_i32_0 = arith.constant 0 : i32
    %c0_i32_1 = arith.constant 0 : i32
    return %c0_i32, %c0_i32_0 : i32, i32
  }
  func.func @transform_7(%arg0: i32) -> (i32, i32) {
    %c0_i32 = arith.constant 0 : i32
    %c0_i32_0 = arith.constant 0 : i32
    %c0_i32_1 = arith.constant 0 : i32
    return %c0_i32, %c0_i32_0 : i32, i32
  }
  func.func @transform_8(%arg0: i32) -> (i32, i32) {
    %c0_i32 = arith.constant 0 : i32
    %c0_i32_0 = arith.constant 0 : i32
    %c0_i32_1 = arith.constant 0 : i32
    return %c0_i32, %c0_i32_0 : i32, i32
  }
  func.func @transform_9(%arg0: i32) -> (i32, i32) {
    %c0_i32 = arith.constant 0 : i32
    %c0_i32_0 = arith.constant 0 : i32
    return %arg0, %c0_i32 : i32, i32
  }
}

</mosaic_0001>

<bundles_post_ra>
// kernel: tpu_custom_call.1
= control target key start
LH: loop header
LB: loop body
LE: loop exit
PB: predicated region body
PF: predicated region fallthrough
CT: control target
= control target key end

     0   :  { %vm48_vm0 = vcmask 1043456   ;;  %v554_v1 = vmov 0.0   ;;  %vm555_vm1 = vmmov 0   ;;  %vm44_vm2 = vcmask 162816   ;;  %s757_s0 = inlined_call_operand.vmem [shape: f32[8,20], index: 0, kind: input, shape index: {}]   ;;  %s758_s1 = inlined_call_operand.vmem [shape: f32[20,128], index: 1, kind: input, shape index: {}]   ;;  %s759_s2 = inlined_call_operand.vmem [shape: f32[1,128], index: 2, kind: input, shape index: {}]   ;;  %s760_s3 = inlined_call_operand.vmem [shape: f32[128,64], index: 3, kind: input, shape index: {}]   ;;  %s761_s4 = inlined_call_operand.vmem [shape: f32[1,64], index: 4, kind: input, shape index: {}]   ;;  %s762_s5 = inlined_call_operand.vmem [shape: f32[64,32], index: 5, kind: input, shape index: {}]   ;;  %s763_s6 = inlined_call_operand.vmem [shape: f32[1,32], index: 6, kind: input, shape index: {}]   ;;  %s764_s7 = inlined_call_operand.vmem [shape: f32[32,128], index: 7, kind: input, shape index: {}]   ;;  %s765_s8 = inlined_call_operand.vmem [shape: f32[1,128], index: 8, kind: input, shape index: {}]   ;;  %s766_s9 = inlined_call_operand.hbm [shape: f32[8,128], index: 9, kind: output, shape index: {}]  }
   0x1   :  { %v36_v0 = vld [vmem:[%s758_s1 + $0x10] sm:$0xf]  ;;  %455 = vmatprep.subr.mxu0 %v554_v1  ;;  %v35_v2 = vld [vmem:[%s758_s1 + $0x8] sm:$0xff]  ;;  %464 = vmatprep.subr.mxu1 %v554_v1  ;;  %v138_v3 = vld [vmem:[%s760_s3 + $0x78] sm:$0xff] }
   0x2   :  { %456 = vmatpush3.msk.msra.mxu0 %vm48_vm0, %v36_v0  ;;  %461 = vmatprep.mubr.msk.f32.mxu0 %vm555_vm1, %v554_v1  ;;  %v137_v4 = vld [vmem:[%s760_s3 + $0x70] sm:$0xff]  ;;  %v34_v5 = vld [vmem:[%s758_s1] sm:$0xff]  ;;  %v136_v7 = vld [vmem:[%s760_s3 + $0x68] sm:$0xff] }
   0x3   :  { %457 = vmatprep.subr.mxu0 %v554_v1  ;;  %465 = vmatpush3.msra.mxu1 %v138_v3  ;;  %v33_v6 = vld [vmem:[%s757_s0] sm:$0xff] }
   0x4   :  { %458 = vmatpush3.msra.mxu0 %v35_v2  ;;  %466 = vmatprep.subr.mxu1 %v554_v1  ;;  %v135_v8 = vld [vmem:[%s760_s3 + $0x60] sm:$0xff] }
   0x5   :  { %459 = vmatprep.subr.mxu0 %v554_v1  ;;  %467 = vmatpush3.msra.mxu1 %v137_v4 }
   0x6   :  { %460 = vmatpush3.msra.mxu0 %v34_v5  ;;  %468 = vmatprep.subr.mxu1 %v554_v1 }
   0x7   :  { %14 = vsyncpa [#allocation3], 0  ;;  %462 = vmatmul.mubr.msk.f32.vlgmr.msra.gmra.mxu0 %vm44_vm2, %v33_v6  ;;  %469 = vmatpush3.msra.mxu1 %v136_v7  ;;  %v134_v9 = vld [vmem:[%s760_s3 + $0x58] sm:$0xff]  ;;  %v133_v10 = vld [vmem:[%s760_s3 + $0x50] sm:$0xff]  ;;  %vm232_vm3 = vcmask 523264   ;;  %vm318_vm4 = vcmask 261120   ;;  %v392_v48 = vlaneseq }
   0x8   :  { %470 = vmatprep.subr.mxu1 %v554_v1  ;;  %496 = vmatprep.mubr.msk.f32.mxu1 %vm555_vm1, %v554_v1  ;;  %v132_v11 = vld [vmem:[%s760_s3 + $0x48] sm:$0xff]  ;;  %v131_v12 = vld [vmem:[%s760_s3 + $0x40] sm:$0xff]  ;;  %v130_v13 = vld [vmem:[%s760_s3 + $0x38] sm:$0xff] }
   0x9   :  { %471 = vmatpush3.msra.mxu1 %v135_v8  ;;  %499 = vmatprep.subr.mxu0 %v554_v1  ;;  %v129_v14 = vld [vmem:[%s760_s3 + $0x30] sm:$0xff]  ;;  %v128_v15 = vld [vmem:[%s760_s3 + $0x28] sm:$0xff]  ;;  %v127_v16 = vld [vmem:[%s760_s3 + $0x20] sm:$0xff]  ;;  %v393_v50 = vand.u32 127, %v392_v48 }
   0xa   :  { %472 = vmatprep.subr.mxu1 %v554_v1  ;;  %515 = vmatprep.mubr.msk.f32.mxu0 %vm555_vm1, %v554_v1  ;;  %v126_v17 = vld [vmem:[%s760_s3 + $0x18] sm:$0xff]  ;;  %v125_v18 = vld [vmem:[%s760_s3 + $0x10] sm:$0xff]  ;;  %v124_v19 = vld [vmem:[%s760_s3 + $0x8] sm:$0xff] }
   0xb   :  { %473 = vmatpush3.msra.mxu1 %v134_v9  ;;  %v123_v20 = vld [vmem:[%s760_s3] sm:$0xff]  ;;  %v224_v21 = vld [vmem:[%s762_s5 + $0x38] sm:$0xff]  ;;  %v223_v22 = vld [vmem:[%s762_s5 + $0x30] sm:$0xff]  ;;  %vm394_vm5 = vcmp.eq.s32.totalorder %v393_v50, 0 }
   0xc   :  { %474 = vmatprep.subr.mxu1 %v554_v1  ;;  %500 = vmatpush3.msra.mxu0 %v224_v21  ;;  %v222_v23 = vld [vmem:[%s762_s5 + $0x28] sm:$0xff]  ;;  %v221_v24 = vld [vmem:[%s762_s5 + $0x20] sm:$0xff]  ;;  %v220_v25 = vld [vmem:[%s762_s5 + $0x18] sm:$0xff] }
   0xd   :  { %475 = vmatpush3.msra.mxu1 %v133_v10  ;;  %501 = vmatprep.subr.mxu0 %v554_v1  ;;  %v412_v26 = vld [vmem:[%s759_s2] ss:$0 sm:$0xff]  ;;  %v219_v31 = vld [vmem:[%s762_s5 + $0x10] sm:$0xff]  ;;  %v218_v32 = vld [vmem:[%s762_s5 + $0x8] sm:$0xff] }
   0xe   :  { %476 = vmatprep.subr.mxu1 %v554_v1  ;;  %502 = vmatpush3.msra.mxu0 %v223_v22  ;;  %v217_v33 = vld [vmem:[%s762_s5] sm:$0xff]  ;;  %v310_v39 = vld [vmem:[%s764_s7 + $0x18] sm:$0xff]  ;;  %v309_v40 = vld [vmem:[%s764_s7 + $0x10] sm:$0xff] }
   0xf   :  { %477 = vmatpush3.msra.mxu1 %v132_v11  ;;  %503 = vmatprep.subr.mxu0 %v554_v1  ;;  %v415_v34 = vld [vmem:[%s761_s4] ss:$0 sm:$0xff]  ;;  %v308_v41 = vld [vmem:[%s764_s7 + $0x8] sm:$0xff] }
  0x10   :  { %478 = vmatprep.subr.mxu1 %v554_v1  ;;  %504 = vmatpush3.msra.mxu0 %v222_v23  ;;  %v307_v42 = vld [vmem:[%s764_s7] sm:$0xff]  ;;  %s556_s7 = smov [#allocation2]  }
  0x11   :  { %479 = vmatpush3.msra.mxu1 %v131_v12  ;;  %505 = vmatprep.subr.mxu0 %v554_v1  ;;  %v416_v43 = vld [vmem:[%s763_s6] ss:$0 sm:$0xff]  ;;  %s404_s29 = sshll.u32 %s556_s7, 4  ;;  %s405_s29 = int_to_ptr.vmem [resolvable:$true] %s404_s29 }
  0x12   :  { %480 = vmatprep.subr.mxu1 %v554_v1  ;;  %506 = vmatpush3.msra.mxu0 %v221_v24  ;;  %v418_v49 = vld [vmem:[%s765_s8] ss:$0 sm:$0xff]  ;;  %s532_s6 = scalar_lea.vmem %s405_s29, 128  ;;  %p537_p1 = scmp.lt.s32.totalorder %s405_s29, %s405_s29 }
  0x13   :  { %481 = vmatpush3.msra.mxu1 %v130_v13  ;;  %507 = vmatprep.subr.mxu0 %v554_v1  ;;  %p533_p0 = scmp.ne.s32.totalorder %s405_s29, %s532_s6  ;;  %p538_p2 = scmp.lt.s32.totalorder %s532_s6, %s532_s6 }
  0x14   :  { %482 = vmatprep.subr.mxu1 %v554_v1  ;;  %508 = vmatpush3.msra.mxu0 %v220_v25 }
  0x15   :  { %483 = vmatpush3.msra.mxu1 %v129_v14  ;;  %509 = vmatprep.subr.mxu0 %v554_v1  ;;  %p539_p3 = por %p538_p2, %p537_p1 }
  0x16   :  { %484 = vmatprep.subr.mxu1 %v554_v1  ;;  %510 = vmatpush3.msra.mxu0 %v219_v31 }
  0x17   :  { %485 = vmatpush3.msra.mxu1 %v128_v15  ;;  %511 = vmatprep.subr.mxu0 %v554_v1  ;;  %p540_p4 = pnand %p539_p3, %p533_p0 }
  0x18   :  { %486 = vmatprep.subr.mxu1 %v554_v1  ;;  %512 = vmatpush3.msra.mxu0 %v218_v32 }
  0x19   :  { %487 = vmatpush3.msra.mxu1 %v127_v16  ;;  %513 = vmatprep.subr.mxu0 %v554_v1 }
  0x1a   :  { %488 = vmatprep.subr.mxu1 %v554_v1  ;;  %514 = vmatpush3.msra.mxu0 %v217_v33 }
  0x1b   :  { %489 = vmatpush3.msra.mxu1 %v126_v17  ;;  %518 = vmatprep.subr.mxu0 %v554_v1 }
  0x1c   :  { %490 = vmatprep.subr.mxu1 %v554_v1 }
  0x1d   :  { %491 = vmatpush3.msra.mxu1 %v125_v18 }
  0x1e   :  { %492 = vmatprep.subr.mxu1 %v554_v1 }
  0x1f   :  { %493 = vmatpush3.msra.mxu1 %v124_v19 }
  0x20   :  { %494 = vmatprep.subr.mxu1 %v554_v1 }
  0x21   :  { %495 = vmatpush3.msra.mxu1 %v123_v20 }
  0xc7   :  { %v118_v27 = vpop.f32.mrf.mxu0 }
  0xc8   :  { %v119_v28 = vadd.f32 %v412_v26, %v118_v27 }
  0xc9   :  { %v463_v29 = vpop.f32.mrf.mxu0 }
  0xca   :  { %v122_v30 = vmax.f32 %v119_v28, 0.0 }
  0xcc   :  { %497 = vmatmul.mubr.f32.vlgmr.msra.gmra.mxu1 %v122_v30 }
 0x18c   :  { %v212_v35 = vpop.f32.mrf.mxu1 }
 0x18d   :  { %v213_v36 = vadd.f32 %v415_v34, %v212_v35 }
 0x18e   :  { %v498_v37 = vpop.f32.mrf.mxu1 }
 0x18f   :  { %v216_v38 = vmax.f32 %v213_v36, 0.0 }
 0x191   :  { %516 = vmatmul.mubr.msk.f32.vlgmr.msra.gmra.mxu0 %vm232_vm3, %v216_v38 }
 0x192   :  { %519 = vmatpush3.msra.mxu0 %v310_v39  ;;  %526 = vmatprep.mubr.msk.f32.mxu0 %vm555_vm1, %v554_v1 }
 0x193   :  { %520 = vmatprep.subr.mxu0 %v554_v1 }
 0x194   :  { %521 = vmatpush3.msra.mxu0 %v309_v40 }
 0x195   :  { %522 = vmatprep.subr.mxu0 %v554_v1 }
 0x196   :  { %523 = vmatpush3.msra.mxu0 %v308_v41 }
 0x197   :  { %524 = vmatprep.subr.mxu0 %v554_v1 }
 0x198   :  { %525 = vmatpush3.msra.mxu0 %v307_v42 }
 0x251   :  { %v302_v44 = vpop.f32.mrf.mxu0 }
 0x252   :  { %v303_v45 = vadd.f32 %v416_v43, %v302_v44 }
 0x253   :  { %v517_v46 = vpop.f32.mrf.mxu0 }
 0x254   :  { %v306_v47 = vmax.f32 %v303_v45, 0.0 }
 0x256   :  { %527 = vmatmul.mubr.msk.f32.vlgmr.msra.gmra.mxu0 %vm318_vm4, %v306_v47 }
 0x316   :  { %v388_v51 = vpop.f32.mrf.mxu0 }
 0x317   :  { %v389_v52 = vadd.f32 %v418_v49, %v388_v51 }
 0x318   :  { %v528_v53 = vpop.f32.mrf.mxu0 }
 0x319   :  { %v395_v54 = vmax.f32 %v389_v52, 0.0 }
 0x31b   :  { %v396_v55 = vsel %vm394_vm5, %v395_v54, %v389_v52 }
 0x31c   :  { %397 = vst [vmem:[#allocation2] sm:$0xff] %v396_v55 }
 0x31d   :  { %543 = shalt.err (!%p540_p4)
}
 0x31e   :  { %407 = dma.vmem_to_hbm [thread:$0]  %s405_s29, 128, %s766_s9, [#allocation3]  }
 0x31f   :  { %552 = dma.done.wait [#allocation3], 128  }
 0x320   :  { %553 = vsyncadd [#allocation3], 4294967168 }
 0x321   :  { %411 = vsyncpa [#allocation3], 1 }

</bundles_post_ra>
